<compile_context>
chip_gen: v5e
topology: v5e:2x2
jax: 0.10.0
libtpu: 0.0.40
codegen_flags: <defaults>
</compile_context>

<pallas_src>
import functools

import jax
import jax.numpy as jnp
import numpy as np
from jax.experimental import pallas as pl
from jax.experimental.pallas import tpu as pltpu


def _round_up(x, m):
    return (x + m - 1) // m * m


# ----------------------- subhead == 0: pure repeat ---------------------------
def _copy_kernel(x_ref, o_ref):
    o_ref[...] = x_ref[...]


def _pick_chunk(SD, B, itemsize, target_bytes=2 << 20):
    """Largest multiple-of-128 divisor of SD with a (B, chunk) block <= target_bytes."""
    cap = max(128, (target_bytes // max(B * itemsize, 1)) // 128 * 128)
    chunk = min(SD, cap)
    chunk -= chunk % 128
    while chunk > 128 and SD % chunk:
        chunk -= 128
    if chunk < 128 or SD % chunk:
        chunk = 128
    return chunk


def repeat_pallas(xx, v, *, materialize=True):
    """xx.unsqueeze(1).repeat(1, v, 1, 1) -> (B, v, S, D), emitted in PyTorch layout."""
    B, S, D = xx.shape
    SD = S * D
    if not materialize:
        # Lazy view: lets a downstream JAX/Pallas consumer fold the v-repeat into
        # its own index_map instead of paying v x the HBM write traffic.
        return jnp.broadcast_to(xx[:, None], (B, v, S, D))

    if SD % 128 == 0:
        # Lane-dense path: write v slabs of (B, S*D) in ~2 MiB chunks into a
        # (B, v*S*D) output; split the last dim for free (contiguous reshape).
        chunk = _pick_chunk(SD, B, xx.dtype.itemsize)
        n_chunks = SD // chunk
        x2d = xx.reshape(B, SD)
        # in + out double-buffered: ~4 * B * chunk * itemsize bytes.
        vmem_limit = int(min(max(8 * B * chunk * xx.dtype.itemsize, 32 << 20), 56 << 20))
        out = pl.pallas_call(
            _copy_kernel,
            out_shape=jax.ShapeDtypeStruct((B, v * SD), xx.dtype),
            grid_spec=pltpu.PrefetchScalarGridSpec(
                num_scalar_prefetch=0,
                grid=(v, n_chunks),
                in_specs=[pl.BlockSpec((B, chunk), lambda i, c: (0, c))],
                out_specs=pl.BlockSpec((B, chunk),
                                       lambda i, c: (0, i * n_chunks + c)),
            ),
            compiler_params=pltpu.CompilerParams(
                dimension_semantics=("parallel", "parallel"),
                vmem_limit_bytes=vmem_limit),
        )(x2d)
        return out.reshape(B, v, S, D)

    # Fallback when S*D is not lane-aligned: full (B, S, D) blocks, v squeezed.
    # TODO(synk): D not a multiple of 128 hits masked vst.msk partial stores;
    # padding D once in a staging buffer and slicing after is cheaper for large v.
    return pl.pallas_call(
        _copy_kernel,
        out_shape=jax.ShapeDtypeStruct((B, v, S, D), xx.dtype),
        grid_spec=pltpu.PrefetchScalarGridSpec(
            num_scalar_prefetch=0,
            grid=(v,),
            in_specs=[pl.BlockSpec((B, S, D), lambda i: (0, 0, 0))],
            out_specs=pl.BlockSpec((B, None, S, D), lambda i: (0, i, 0, 0)),
        ),
        compiler_params=pltpu.CompilerParams(
            dimension_semantics=("parallel",)),
    )(xx)


# ----------- subhead == 1: compute-once Flatten(-2) + Linear of head ind -----
def _flatten_head_kernel(ind_ref, x_ref, w_ref, b_ref, o_ref, acc_ref):
    # x_ref: (B, block_k) input dtype; w_ref: (tn, block_k) compute dtype, K lane-dense
    # b_ref: (1, tn) f32; o_ref: (B, tn); acc_ref: (B, tn) f32 scratch across the K grid.
    del ind_ref  # consumed by the weight/bias BlockSpec index_maps (head gather)
    k = pl.program_id(1)

    @pl.when(k == 0)
    def _():
        acc_ref[...] = jnp.zeros_like(acc_ref)

    # Contract the lane-dense last dims: (B, bk) x (tn, bk) -> (B, tn), f32 acc on MXU.
    acc_ref[...] += jax.lax.dot_general(
        x_ref[...].astype(w_ref.dtype), w_ref[...],
        dimension_numbers=(((1,), (1,)), ((), ())),
        preferred_element_type=jnp.float32)

    @pl.when(k == pl.num_programs(1) - 1)
    def _():
        o_ref[...] = (acc_ref[...] + b_ref[...]).astype(o_ref.dtype)  # f32 epilogue


def _pick_block_t(T):
    """Tile the output/N axis only when it is large and lane-aligned (v7x parallel axis)."""
    if T >= 256 and T % 256 == 0:
        return 256
    if T >= 256 and T % 128 == 0:
        return 128
    return T


def _pick_block_k(K_pad, tn, B, w_bytes, *, budget_bytes=20 << 20, max_bk=16384):
    """Largest multiple-of-128 divisor of K_pad whose double-buffered footprint fits."""
    per_k = 2 * tn * w_bytes + 2 * max(B, 8) * 4          # bytes per unit of block_k
    cap = max(128, (budget_bytes // per_k) // 128 * 128)
    bk = min(cap, max_bk, K_pad)
    bk -= bk % 128
    while bk > 128 and K_pad % bk:
        bk -= 128
    if bk < 128 or K_pad % bk:
        bk = 128
    return bk


def flatten_head_pallas(xx, v, ind, w_stack, b_stack, *, block_k=None,
                        weight_buffers=None):
    """repeat(1, v, 1, 1) + Flatten(-2) + Linear of head `ind`, matmul computed once."""
    B, S, D = xx.shape
    H, T, K_pad = w_stack.shape
    K = S * D
    assert K_pad >= K and K_pad % 128 == 0

    tn = _pick_block_t(T)
    nt = T // tn
    w_bytes = jnp.dtype(w_stack.dtype).itemsize
    if block_k is None:
        block_k = _pick_block_k(K_pad, tn, B, w_bytes)
    assert K_pad % block_k == 0
    nk = K_pad // block_k

    x_flat = xx.reshape(B, K)                       # free, contiguous
    if K_pad != K:
        x_flat = jnp.pad(x_flat, ((0, 0), (0, K_pad - K)))   # zeros: exact matmul
    # Clip prevents DMA-level OOB; note PyTorch would raise on an out-of-range index.
    ind_arr = jnp.reshape(jnp.clip(ind, 0, H - 1), (1,)).astype(jnp.int32)

    # Explicit VMEM budget (v7x-safe): double-buffered weight + x tiles, acc/out/bias.
    est = (2 * tn * block_k * w_bytes
           + 2 * max(B, 8) * block_k * x_flat.dtype.itemsize
           + 2 * max(B, 8) * max(tn, 128) * 4)
    vmem_limit = int(min(max(2 * est, 32 << 20), 56 << 20))

    w_spec_kwargs = {}
    if weight_buffers is not None:
        # Deepen the weight pipeline (pure-DMA pipeline) if start latency is exposed.
        w_spec_kwargs["pipeline_mode"] = pl.Buffered(weight_buffers)

    y = pl.pallas_call(
        _flatten_head_kernel,
        out_shape=jax.ShapeDtypeStruct((B, T), xx.dtype),
        grid_spec=pltpu.PrefetchScalarGridSpec(
            num_scalar_prefetch=1,
            grid=(nt, nk),   # T tiles parallel (megacore), K innermost reduction
            in_specs=[
                pl.BlockSpec((B, block_k), lambda t, k, ind_r: (0, k)),
                pl.BlockSpec((None, tn, block_k),
                             lambda t, k, ind_r: (ind_r[0], t, k), **w_spec_kwargs),
                pl.BlockSpec((None, 1, tn), lambda t, k, ind_r: (ind_r[0], 0, t)),
            ],
            out_specs=pl.BlockSpec((B, tn), lambda t, k, ind_r: (0, t)),
            scratch_shapes=[pltpu.VMEM((B, tn), jnp.float32)],
        ),
        compiler_params=pltpu.CompilerParams(
            dimension_semantics=("parallel", "arbitrary"),
            vmem_limit_bytes=vmem_limit),
    )(ind_arr, x_flat, w_stack, b_stack)

    # v-fold expansion of the tiny (B, T) result (negligible HBM traffic), PyTorch layout.
    return jnp.broadcast_to(y[:, None, :], (B, v, T))


# ------------------------------- module --------------------------------------
class MultFlattenHead:
    def __init__(self, head_layers, subhead, *, compute_dtype=jnp.bfloat16):
        # head_layers: list of (W: (K, T), b: (T,)) pairs, i.e. FlattenHead linears.
        # Weights are stored TRANSPOSED and K-padded as (H, T, K_pad): the contraction
        # axis K is the lane-dense last dim (full-bandwidth weight DMA, no lane padding).
        # Pass compute_dtype=jnp.float32 for strict parity with PyTorch's f32 Linear.
        # TODO(synk): the original head blocks may also include Dropout; eval-mode no-op here.
        self.subhead = subhead
        self.head_blocks = None
        if subhead == 1:
            K = head_layers[0][0].shape[0]
            K_pad = _round_up(K, 128)
            ws = []
            for w, _ in head_layers:
                wt = jnp.asarray(w).T                          # (T, K)
                if K_pad != K:
                    wt = jnp.pad(wt, ((0, 0), (0, K_pad - K)))
                ws.append(wt)
            ws = jnp.stack(ws).astype(compute_dtype)           # (H, T, K_pad)
            bs = jnp.stack([jnp.asarray(b).reshape(1, -1)
                            for _, b in head_layers]).astype(jnp.float32)  # (H, 1, T)
            self.head_blocks = (ws, bs)

    def forward(self, x, y_pred, *, num_classes, block_k=None, weight_buffers=None):
        # TODO(synk): for many small-B (xx, v) pairs, stacking pairs into one batched
        # pallas_call would fill sublanes and amortize launch overhead.
        freu = jnp.bincount(y_pred, length=num_classes)            # counts per class
        ffreu = jnp.bincount(freu, length=y_pred.shape[0] + 1)     # counts of counts
        if self.subhead == 0:
            for xx, v in x:
                yield repeat_pallas(xx, v)
        elif self.subhead == 1:
            ws, bs = self.head_blocks
            for j, (xx, v) in enumerate(x):
                indexs = v
                d = jnp.sum(ffreu[:v] == 0)
                ind = indexs - d
                yield flatten_head_pallas(xx, v, ind, ws, bs, block_k=block_k,
                                          weight_buffers=weight_buffers)


# -------------------------------- demo ---------------------------------------
if __name__ == "__main__":
    key = jax.random.PRNGKey(0)
    B, S, D, T = 2, 8, 32, 16
    K = S * D                      # 256
    num_classes = 4
    N = 8                          # len(y_pred)

    k1, k2, k3, kw, kb = jax.random.split(key, 5)
    xx0 = jax.random.normal(k1, (B, S, D), jnp.float32)
    xx1 = jax.random.normal(k2, (B, S, D), jnp.float32)
    y_pred = jax.random.randint(k3, (N,), 0, num_classes)

    x = [(xx0, 3), (xx1, 2)]       # (tensor, v) pairs, as in the PyTorch forward
    max_v = max(v for _, v in x)
    H = max_v + 1                  # ind = v - d lies in [0, max_v]

    # Deterministic FlattenHead parameters: Linear(K, T) per head.
    wkeys = jax.random.split(kw, H)
    bkeys = jax.random.split(kb, H)
    bound = 1.0 / np.sqrt(K)
    head_layers = [
        (jax.random.uniform(wkeys[h], (K, T), jnp.float32, -bound, bound),
         jax.random.uniform(bkeys[h], (T,), jnp.float32, -bound, bound))
        for h in range(H)
    ]

    # ---- subhead == 1: repeat + flatten + selected head (compute-once, K-tiled) ----
    model = MultFlattenHead(head_layers, subhead=1)
    outs = [jax.block_until_ready(o)
            for o in model.forward(x, y_pred, num_classes=num_classes)]

    # Plain-JAX reference of the exact PyTorch semantics (f32, highest precision).
    freu = jnp.bincount(y_pred, length=num_classes)
    ffreu = jnp.bincount(freu, length=N + 1)
    for (xx, v), got in zip(x, outs):
        d = jnp.sum(ffreu[:v] == 0)
        ind = int(v - d)
        w_ref, b_ref = head_layers[ind]
        rep = jnp.broadcast_to(xx[:, None], (B, v, S, D)).reshape(B, v, K)
        ref = jnp.einsum("bvk,kt->bvt", rep, w_ref,
                         precision=jax.lax.Precision.HIGHEST) + b_ref
        assert got.shape == (B, v, T), got.shape
        np.testing.assert_allclose(np.asarray(got), np.asarray(ref),
                                   rtol=2e-2, atol=2e-2)

    # ---- subhead == 0: pure repeat (materialized via the Pallas copy kernel) ----
    model0 = MultFlattenHead(None, subhead=0)
    outs0 = [jax.block_until_ready(o)
             for o in model0.forward(x, y_pred, num_classes=num_classes)]
    for (xx, v), got in zip(x, outs0):
        assert got.shape == (B, v, S, D)
        np.testing.assert_allclose(
            np.asarray(got),
            np.asarray(jnp.broadcast_to(xx[:, None], (B, v, S, D))))

    print("KERNEL_OK")
</pallas_src>

<mosaic_0001>
module attributes {stable_mosaic.version = 11 : i64} {
  func.func @_flatten_head_kernel(%arg0: i32, %arg1: i32, %arg2: memref<1xi32, #tpu.memory_space<smem>>, %arg3: memref<2x256xf32, #tpu.memory_space<vmem>>, %arg4: memref<1x16x256xbf16, #tpu.memory_space<vmem>>, %arg5: memref<1x1x16xf32, #tpu.memory_space<vmem>>, %arg6: memref<2x16xf32, #tpu.memory_space<vmem>>, %arg7: memref<2x16xf32, #tpu.memory_space<vmem>>) attributes {dimension_semantics = [#tpu.dimension_semantics<parallel>, #tpu.dimension_semantics<arbitrary>], iteration_bounds = array<i64: 1, 1>, scalar_prefetch = 1 : i64, scratch_operands = 1 : i64, tpu.core_type = #tpu.core_type<tc>, window_params = [{transform_indices = @transform_0, window_bounds = array<i64: 2, 256>}, {transform_indices = @transform_1, window_bounds = array<i64: 1, 16, 256>}, {transform_indices = @transform_2, window_bounds = array<i64: 1, 1, 16>}, {transform_indices = @transform_3, window_bounds = array<i64: 2, 16>}]} {
    %c0_i32 = arith.constant 0 : i32
    %0 = arith.cmpi eq, %arg1, %c0_i32 : i32
    %1 = arith.extui %0 : i1 to i32
    %c0_i32_0 = arith.constant 0 : i32
    %2 = arith.cmpi ne, %1, %c0_i32_0 : i32
    scf.if %2 {
      %cst_11 = arith.constant 0.000000e+00 : f32
      %14 = vector.broadcast %cst_11 : f32 to vector<2x16xf32>
      %c0_12 = arith.constant 0 : index
      %c0_13 = arith.constant 0 : index
      %15 = vector.load %arg7[%c0_12, %c0_13] : memref<2x16xf32, #tpu.memory_space<vmem>>, vector<2x16xf32>
      tpu.vector_store %arg7[%c0_12, %c0_13], %14 {strides = array<i32>} : memref<2x16xf32, #tpu.memory_space<vmem>>, vector<2x16xf32>,
    } else {
    }
    %c0 = arith.constant 0 : index
    %c0_1 = arith.constant 0 : index
    %3 = vector.load %arg7[%c0, %c0_1] : memref<2x16xf32, #tpu.memory_space<vmem>>, vector<2x16xf32>
    %c0_2 = arith.constant 0 : index
    %c0_3 = arith.constant 0 : index
    %4 = vector.load %arg3[%c0_2, %c0_3] : memref<2x256xf32, #tpu.memory_space<vmem>>, vector<2x256xf32>
    %5 = arith.truncf %4 : vector<2x256xf32> to vector<2x256xbf16>
    %c0_4 = arith.constant 0 : index
    %c0_5 = arith.constant 0 : index
    %c0_6 = arith.constant 0 : index
    %6 = vector.load %arg4[%c0_4, %c0_5, %c0_6] : memref<1x16x256xbf16, #tpu.memory_space<vmem>>, vector<1x16x256xbf16>
    %7 = vector.shape_cast %6 : vector<1x16x256xbf16> to vector<16x256xbf16>
    %cst = arith.constant dense<0.000000e+00> : vector<2x16xf32>
    %8 = tpu.matmul %5, %7, %cst {dimension_numbers = #tpu.dot_dimension_numbers<[1], [1], [0], [0], [0, 0, 1, 0], [], []>} : vector<2x256xbf16>, vector<16x256xbf16>, vector<2x16xf32> -> vector<2x16xf32>
    %9 = arith.addf %3, %8 : vector<2x16xf32>
    %c0_7 = arith.constant 0 : index
    %c0_8 = arith.constant 0 : index
    %10 = vector.load %arg7[%c0_7, %c0_8] : memref<2x16xf32, #tpu.memory_space<vmem>>, vector<2x16xf32>
    tpu.vector_store %arg7[%c0_7, %c0_8], %9 {strides = array<i32>} : memref<2x16xf32, #tpu.memory_space<vmem>>, vector<2x16xf32>,
    %c0_i32_9 = arith.constant 0 : i32
    %11 = arith.cmpi eq, %arg1, %c0_i32_9 : i32
    %12 = arith.extui %11 : i1 to i32
    %c0_i32_10 = arith.constant 0 : i32
    %13 = arith.cmpi ne, %12, %c0_i32_10 : i32
    scf.if %13 {
      %c0_11 = arith.constant 0 : index
      %c0_12 = arith.constant 0 : index
      %14 = vector.load %arg7[%c0_11, %c0_12] : memref<2x16xf32, #tpu.memory_space<vmem>>, vector<2x16xf32>
      %c0_13 = arith.constant 0 : index
      %c0_14 = arith.constant 0 : index
      %c0_15 = arith.constant 0 : index
      %15 = vector.load %arg5[%c0_13, %c0_14, %c0_15] : memref<1x1x16xf32, #tpu.memory_space<vmem>>, vector<1x1x16xf32>
      %16 = vector.shape_cast %15 : vector<1x1x16xf32> to vector<1x16xf32>
      %17 = vector.broadcast %16 : vector<1x16xf32> to vector<2x16xf32>
      %18 = arith.addf %14, %17 : vector<2x16xf32>
      %c0_16 = arith.constant 0 : index
      %c0_17 = arith.constant 0 : index
      %19 = vector.load %arg6[%c0_16, %c0_17] : memref<2x16xf32, #tpu.memory_space<vmem>>, vector<2x16xf32>
      tpu.vector_store %arg6[%c0_16, %c0_17], %18 {strides = array<i32>} : memref<2x16xf32, #tpu.memory_space<vmem>>, vector<2x16xf32>,
    } else {
    }
    return
  }
  func.func @transform_0(%arg0: i32, %arg1: i32, %arg2: memref<1xi32, #tpu.memory_space<smem>>) -> (i32, i32) {
    %c0_i32 = arith.constant 0 : i32
    %c0_i32_0 = arith.constant 0 : i32
    return %c0_i32, %arg1 : i32, i32
  }
  func.func @transform_1(%arg0: i32, %arg1: i32, %arg2: memref<1xi32, #tpu.memory_space<smem>>) -> (i32, i32, i32) {
    %c0 = arith.constant 0 : index
    %0 = memref.load %arg2[%c0] : memref<1xi32, #tpu.memory_space<smem>>
    %c0_i32 = arith.constant 0 : i32
    return %0, %arg0, %arg1 : i32, i32, i32
  }
  func.func @transform_2(%arg0: i32, %arg1: i32, %arg2: memref<1xi32, #tpu.memory_space<smem>>) -> (i32, i32, i32) {
    %c0 = arith.constant 0 : index
    %0 = memref.load %arg2[%c0] : memref<1xi32, #tpu.memory_space<smem>>
    %c0_i32 = arith.constant 0 : i32
    %c0_i32_0 = arith.constant 0 : i32
    return %0, %c0_i32, %arg0 : i32, i32, i32
  }
  func.func @transform_3(%arg0: i32, %arg1: i32, %arg2: memref<1xi32, #tpu.memory_space<smem>>) -> (i32, i32) {
    %c0_i32 = arith.constant 0 : i32
    %c0_i32_0 = arith.constant 0 : i32
    return %c0_i32, %arg0 : i32, i32
  }
}

</mosaic_0001>

<bundles_post_ra>
// kernel: tpu_custom_call.1
= control target key start
LH: loop header
LB: loop body
LE: loop exit
PB: predicated region body
PF: predicated region fallthrough
CT: control target
= control target key end

     0   :  { %10 = vsyncpa [#allocation6], 0  ;;  %s345_s0 = inlined_call_operand.<no memory space> [shape: s32[1], index: 0, kind: input, shape index: {}]   ;;  %s346_s1 = inlined_call_operand.hbm [shape: f32[2,256], index: 1, kind: input, shape index: {}]   ;;  %s347_s2 = inlined_call_operand.hbm [shape: bf16[4,16,256], index: 2, kind: input, shape index: {}]   ;;  %s348_s3 = inlined_call_operand.hbm [shape: f32[4,1,16], index: 3, kind: input, shape index: {}]   ;;  %s349_s4 = inlined_call_operand.hbm [shape: f32[2,16], index: 4, kind: output, shape index: {}]  }
   0x1   :  { %11 = vsyncpa [#allocation9], 0  ;;  %s167_s17 = sshll.u32 %s345_s0, 4 }
   0x2   :  { %12 = vsyncpa [#allocation7], 0  ;;  %s31_s20 = scalar_lea.hbm %s347_s2, %s167_s17  ;;  %s280_s21 = smov [#allocation8]  }
   0x3   :  { %s34_s22 = sshll.u32 %s280_s21, 4  ;;  %s32_s23 = sshll.u32 %s31_s20, 4  ;;  %s35_s22 = int_to_ptr.vmem [resolvable:$true] %s34_s22  ;;  %s33_s23 = int_to_ptr.hbm [resolvable:$true] %s32_s23 }
   0x4   :  { %s18_s26 = sshll.u32 %s346_s1, 4  ;;  %s178_s27 = sshra.s32 %s33_s23, 4  ;;  %s179_s27 = int_to_ptr.hbm [resolvable:$true] %s178_s27  ;;  %s19_s26 = int_to_ptr.hbm [resolvable:$true] %s18_s26 }
   0x5   :  { %s180_s28 = scalar_lea.hbm %s179_s27, 16  ;;  %s182_s5 = scalar_lea.hbm %s347_s2, 64 }
   0x6   :  { %p181_p0 = scmp.ne.s32.totalorder %s179_s27, %s180_s28  ;;  %p183_p1 = scmp.lt.s32.totalorder %s179_s27, %s347_s2 }
   0x7   :  { %p184_p2 = scmp.lt.s32.totalorder %s182_s5, %s180_s28 }
   0x9   :  { %p185_p3 = por %p184_p2, %p183_p1 }
   0xb   :  { %p186_p4 = pnand %p185_p3, %p181_p0 }
   0xd   :  { %189 = shalt.err (!%p186_p4)
}
   0xe   :  { %s281_s8 = smov 128   ;;  %s282_s9 = smov 8  }
   0xf   :  { %40 = dma.hbm_to_vmem [thread:$0]  %s33_s23, 256, %s35_s22, [#allocation9], %s281_s8, %s281_s8, %s282_s9  }
  0x10   :  { %s283_s1 = smov [#allocation5]   ;;  %s46_s15 = scalar_lea.hbm %s348_s3, %s345_s0 }
  0x11   :  { %s20_s10 = sshll.u32 %s283_s1, 4  ;;  %s48_s16 = sshll.u32 %s46_s15, 4  ;;  %s21_s10 = int_to_ptr.vmem [resolvable:$true] %s20_s10  ;;  %s49_s16 = int_to_ptr.hbm [resolvable:$true] %s48_s16 }
  0x12   :  { %23 = dma.hbm_to_vmem [thread:$0]  %s19_s26, 64, %s21_s10, [#allocation6]  }
  0x13   :  { %s284_s2 = smov [#allocation10]   ;;  %s226_s18 = sshra.s32 %s49_s16, 4  ;;  %s227_s18 = int_to_ptr.hbm [resolvable:$true] %s226_s18 }
  0x14   :  { %s50_s17 = sshll.u32 %s284_s2, 4  ;;  %s228_s19 = scalar_lea.hbm %s227_s18, 1  ;;  %s51_s17 = int_to_ptr.vmem [resolvable:$true] %s50_s17 }
  0x15   :  { %p229_p5 = scmp.ne.s32.totalorder %s227_s18, %s228_s19  ;;  %s230_s22 = scalar_lea.hbm %s348_s3, 4 }
  0x16   :  { %p231_p6 = scmp.lt.s32.totalorder %s227_s18, %s348_s3  ;;  %p232_p7 = scmp.lt.s32.totalorder %s230_s22, %s228_s19 }
  0x18   :  { %p233_p8 = por %p232_p7, %p231_p6 }
  0x1a   :  { %p234_p9 = pnand %p233_p8, %p229_p5 }
  0x1c   :  { %237 = shalt.err (!%p234_p9)
}
  0x1d   :  { %53 = dma.hbm_to_vmem [thread:$0]  %s49_s16, 16, %s51_s17, [#allocation9]  }
  0x1e   :  { %274 = dma.done.wait [#allocation6], 64  }
  0x1f   :  { %275 = vsyncadd [#allocation6], 4294967232 }
  0x20   :  { %276 = dma.done.wait [#allocation9], 272  }
  0x21   :  { %277 = vsyncadd [#allocation9], 4294967024  ;;  %v161_v0 = vld [vmem:[#allocation8] sm:$0xf]  ;;  %v169_v1 = vld [vmem:[#allocation8 + $0x4] sm:$0xf0] }
  0x22   :  { %v168_v2 = vld [vmem:[#allocation8 + $0x4] sm:$0xf]  ;;  %v162_v3 = vor.u32 %v169_v1, %v161_v0  ;;  %v163_v4 = vld [vmem:[#allocation8 + $0x8] sm:$0xf0]  ;;  %v76_v5 = vld [vmem:[#allocation5] sm:$0xf] }
  0x23   :  { %v166_v6 = vor.u32 %v168_v2, %v163_v4  ;;  %78 = vst [vmem:[#allocation1] ss:$4 sm:$0xff] %v76_v5  ;;  %vm73_vm0 = vcmask 123904   ;;  %v285_v11 = vmov 0.0   ;;  %v177_v19 = vld [vmem:[#allocation10] ss:$0 sm:$0xff] }
  0x24   :  { %104 = vmatpush.bf16.xpose.msra.mxu0 %v162_v3  ;;  %74 = vst.msk [vmem:[#allocation2] sm:$0x3] %vm73_vm0, %v285_v11  ;;  %s286_s0 = smov [#allocation11]   ;;  %s143_s27 = sshll.u32 %s349_s4, 4  ;;  %s144_s27 = int_to_ptr.hbm [resolvable:$true] %s143_s27 }
  0x25   :  { %117 = vmatpush.bf16.xpose.msra.mxu1 %v166_v6  ;;  %s141_s3 = sshll.u32 %s286_s0, 4  ;;  %s142_s3 = int_to_ptr.vmem [resolvable:$true] %s141_s3 }
  0x2a   :  { %v79_v7 = vld.sshfl [vmem:[#allocation1] sm:$0xff pattern:$0x73625140]  ;;  %v80_v8 = vld.sshfl [vmem:[#allocation1 + $0x8] sm:$0xff pattern:$0x73625140] }
  0x2b   :  { %v83_v9 = vpack.c.bf16 %v79_v7, %v79_v7  ;;  %v84_v10 = vpack.c.bf16 %v80_v8, %v80_v8  ;;  %v75_v13 = vld [vmem:[#allocation2] sm:$0x3] }
  0x2d   :  { %105 = vmatmul.bf16.vlgmr.msra.gmra.mxu0 %v83_v9  ;;  %118 = vmatmul.bf16.vlgmr.msra.gmra.mxu1 %v84_v10 }
  0xaa   :  { %v106_v12 = vpop.f32.mrf.mxu0  ;;  %v119_v14 = vpop.f32.mrf.mxu1 }
  0xab   :  { %v120_v15 = vadd.f32 %v119_v14, %v106_v12 }
  0xad   :  { %v123_v16 = vadd.f32 %v120_v15, %v75_v13 }
  0xaf   :  { %125 = vst.msk [vmem:[#allocation2] sm:$0x3] %vm73_vm0, %v123_v16 }
  0xb2   :  { %v108_v17 = vpop.f32.mrf.mxu0  ;;  %v121_v18 = vpop.f32.mrf.mxu1 }
  0xb6   :  { %v129_v20 = vld [vmem:[#allocation2] sm:$0x3] }
  0xb7   :  { %v134_v21 = vadd.f32 %v177_v19, %v129_v20 }
  0xb9   :  { %135 = vst.msk [vmem:[#allocation11] sm:$0x3] %vm73_vm0, %v134_v21 }
  0xba   :  { %146 = dma.vmem_to_hbm [thread:$0]  %s142_s3, 32, %s144_s27, [#allocation7]  }
  0xbb   :  { %278 = dma.done.wait [#allocation7], 32  }
  0xbc   :  { %279 = vsyncadd [#allocation7], 4294967264 }
  0xbd   :  { %151 = vsyncpa [#allocation6], 1 }
  0xbe   :  { %152 = vsyncpa [#allocation9], 1 }
  0xbf   :  { %153 = vsyncpa [#allocation7], 1 }

</bundles_post_ra>
